<compile_context>
chip_gen: v7x
topology: tpu7x:2x2x1
jax: 0.10.0
libtpu: 0.0.40
codegen_flags: <defaults>
</compile_context>

<pallas_src>
import math

import jax
import jax.numpy as jnp
from jax import lax
from jax.experimental import pallas as pl
from jax.experimental.pallas import tpu as pltpu


# ---------------------------------------------------------------------------
# Kernel bodies
# ---------------------------------------------------------------------------
def _attn_pool_compute(x_dn, x_nd, cls_ref, w_ref, b_ref, o_ref):
    """Fused compute shared by both kernels.

    x_dn: (bb, D, N) value -- channel-major view  (torch x.view(B, D, -1))
    x_nd: (bb, N, D) value -- row-major view      (torch x.view(-1, D), per batch)
    cls_ref: (1, D); w_ref: (D, D) stored (out, in); b_ref: (1, D); o_ref: (bb, D)
    """
    bb, d_dim, n_tok = x_dn.shape
    xdt = x_dn.dtype
    cls = cls_ref[...]                                                    # (1, D)

    # --- attention logits: MXU contraction over D (contract last dims) ----
    cls3 = jnp.broadcast_to(cls.astype(xdt)[None], (bb, 1, d_dim))        # (bb,1,D)
    logits = jnp.einsum('bkd,bnd->bkn', cls3, x_nd,
                        preferred_element_type=jnp.float32)               # (bb,1,N)

    # --- softmax numerator; denominator folded into the epilogue ----------
    m = jnp.max(logits, axis=-1, keepdims=True)                           # (bb,1,1)
    e = jnp.exp(logits - m)                                               # (bb,1,N)
    denom = jnp.sum(e, axis=-1, keepdims=True)                            # (bb,1,1)

    # --- un-normalized weighted pooling: MXU contraction over N -----------
    pooled_un = jnp.einsum('bkn,bdn->bkd', e.astype(xdt), x_dn,
                           preferred_element_type=jnp.float32)            # (bb,1,D)
    # Normalize on the small (bb, D) epilogue (approx=True is available when a
    # looser bf16-style tolerance is acceptable).
    pooled3 = pooled_un * pl.reciprocal(denom, approx=False)              # (bb,1,D)

    cls_f = cls.astype(jnp.float32)                                       # (1, D)
    h = pooled3[:, 0, :] + cls_f                                          # (bb, D)

    # --- fc(h) = h @ W.T + b : W kept (out, in), no wrapper-side transpose
    y = lax.dot_general(h.astype(w_ref.dtype), w_ref[...],
                        dimension_numbers=(((1,), (1,)), ((), ())),
                        preferred_element_type=jnp.float32)               # (bb, D)
    o_ref[...] = (y + b_ref[...].astype(jnp.float32) + cls_f).astype(o_ref.dtype)


def _attn_pool_kernel(x_ref, cls_ref, w_ref, b_ref, o_ref):
    """Single-stream kernel: x streamed once as (bb, D, N); the row-major (bb, N, D)
    reinterpretation (== torch .view(-1, D)) is derived VMEM-locally."""
    x_dn = x_ref[...]                                       # (bb, D, N)
    bb, d_dim, n_tok = x_dn.shape
    x_nd = x_dn.reshape(bb, n_tok, d_dim)                   # VMEM-local row-major relayout
    _attn_pool_compute(x_dn, x_nd, cls_ref, w_ref, b_ref, o_ref)


def _attn_pool_kernel_dual(x_nd_ref, x_dn_ref, cls_ref, w_ref, b_ref, o_ref):
    """Fallback (streams x twice) for Mosaic versions that cannot lower the in-kernel
    row-major relayout.  Same math, 2x HBM traffic."""
    _attn_pool_compute(x_dn_ref[...], x_nd_ref[...], cls_ref, w_ref, b_ref, o_ref)


# ---------------------------------------------------------------------------
# Wrapper / tiling
# ---------------------------------------------------------------------------
def _vmem_capacity_bytes():
    try:
        return int(pltpu.get_tpu_info().vmem_capacity_bytes)
    except Exception:
        return 64 * 1024 * 1024          # conservative default: v7x per-TensorCore VMEM


def _pick_batch_block(batch, bytes_per_image, vmem_budget):
    """Largest batch block (multiple of 8, capped at 128) whose x tiles fit the budget;
    small batches run as a single full block."""
    if batch <= 8:
        return batch
    # ~3 live copies of the x tile: 2 double-buffered pipeline slots + the in-kernel
    # row-major reinterpretation.
    cap = max(8, int(vmem_budget // max(1, 3 * bytes_per_image)))
    bb = min(batch, 128, cap)
    return max(8, (bb // 8) * 8)


def attention_pooling_forward(x, cls_vec, fc_w, fc_b):
    """x: (B, in_dim, *spatial) -> (B, in_dim), matching AttentionPooling.forward.
    NOTE: torch's trailing .squeeze() would drop the batch dim when B == 1; this
    wrapper always returns (B, in_dim)."""
    B, D = x.shape[0], x.shape[1]
    N = int(math.prod(x.shape[2:])) if x.ndim > 2 else 1

    # Contiguous row-major reshape: pure metadata, no HBM pass.
    x_dn = x.reshape(B, D, N)
    cls = cls_vec.reshape(1, D)           # parameters stay in their model dtype
    w_oi = fc_w                           # (out, in); contracted on axis 1 in-kernel
    b = fc_b.reshape(1, D)

    itemsize = x.dtype.itemsize
    vmem_cap = _vmem_capacity_bytes()
    vmem_budget = max(16 << 20, min(vmem_cap, 128 << 20) - (16 << 20))
    bb = _pick_batch_block(B, D * N * itemsize, vmem_budget)
    grid = (pl.cdiv(B, bb),)              # partial last block is masked by Pallas

    # Constant-index operands are DMA'd once by the pipeline.  (If VMEM headroom gets
    # tight, pipeline_mode=pl.Buffered(1) on these specs would drop their 2nd buffer.)
    const_specs = [
        pl.BlockSpec((1, D), lambda i: (0, 0)),        # cls_vec
        pl.BlockSpec((D, D), lambda i: (0, 0)),        # fc.weight (out, in)
        pl.BlockSpec((1, D), lambda i: (0, 0)),        # fc.bias
    ]
    out_spec = pl.BlockSpec((bb, D), lambda i: (i, 0))
    out_shape = jax.ShapeDtypeStruct((B, D), x.dtype)

    # Rough per-step VMEM: x tile (2 pipeline bufs + in-kernel relayout), params
    # (double-buffered), output (double-buffered).
    est = (3 * bb * D * N + 2 * (D * D + 4 * D) + 2 * bb * D) * itemsize
    vmem_limit = int(min(max(32 << 20, 2 * est), vmem_budget))
    cparams = pltpu.CompilerParams(
        dimension_semantics=("parallel",), vmem_limit_bytes=vmem_limit)

    try:
        out = pl.pallas_call(
            _attn_pool_kernel,
            out_shape=out_shape,
            grid=grid,
            in_specs=[pl.BlockSpec((bb, D, N), lambda i: (i, 0, 0))] + const_specs,
            out_specs=out_spec,
            compiler_params=cparams,
        )(x_dn, cls, w_oi, b)
        return jax.block_until_ready(out)
    except Exception:
        # Older Mosaic: the (bb, D, N) -> (bb, N, D) value relayout is unsupported.
        # Fall back to streaming both row-major views of x (2x HBM traffic).
        x_nd = x.reshape(B, N, D)
        return pl.pallas_call(
            _attn_pool_kernel_dual,
            out_shape=out_shape,
            grid=grid,
            in_specs=[pl.BlockSpec((bb, N, D), lambda i: (i, 0, 0)),
                      pl.BlockSpec((bb, D, N), lambda i: (i, 0, 0))] + const_specs,
            out_specs=out_spec,
            compiler_params=cparams,
        )(x_nd, x_dn, cls, w_oi, b)


# ---------------------------------------------------------------------------
# Reference + self-test
# ---------------------------------------------------------------------------
def _reference(x, cls_vec, fc_w, fc_b):
    """Pure-JAX reference replicating the PyTorch forward exactly (row-major views)."""
    B, D = x.shape[0], x.shape[1]
    flat = x.reshape(-1, D)                                   # torch x.view(-1, D)
    w = jax.nn.softmax((flat @ cls_vec).reshape(B, -1), axis=-1)
    pooled = jnp.einsum('bdn,bn->bd', x.reshape(B, D, -1), w)
    h = pooled + cls_vec
    return h @ fc_w.T + fc_b + cls_vec


if __name__ == "__main__":
    B, D, H, W = 2, 32, 4, 4          # batch=2, in_dim=32, 4x4 feature map (N=16 tokens)

    key = jax.random.PRNGKey(0)
    k1, k2, k3, k4 = jax.random.split(key, 4)
    x = jax.random.normal(k1, (B, D, H, W), jnp.float32)
    cls_vec = jax.random.normal(k2, (D,), jnp.float32)         # nn.Parameter(randn(in_dim))
    fc_w = jax.random.normal(k3, (D, D), jnp.float32) * 0.1    # nn.Linear weight (out, in)
    fc_b = jax.random.normal(k4, (D,), jnp.float32) * 0.1      # nn.Linear bias

    out = jax.block_until_ready(attention_pooling_forward(x, cls_vec, fc_w, fc_b))
    ref = _reference(x, cls_vec, fc_w, fc_b)

    assert out.shape == (B, D), out.shape
    err = float(jnp.max(jnp.abs(out - ref)))
    assert err < 1e-3, f"max abs err {err}"
    print("KERNEL_OK")
</pallas_src>

<mosaic_0001>
module attributes {stable_mosaic.version = 11 : i64} {
  func.func @_attn_pool_kernel(%arg0: i32, %arg1: memref<2x32x16xf32, #tpu.memory_space<vmem>>, %arg2: memref<1x32xf32, #tpu.memory_space<vmem>>, %arg3: memref<32x32xf32, #tpu.memory_space<vmem>>, %arg4: memref<1x32xf32, #tpu.memory_space<vmem>>, %arg5: memref<2x32xf32, #tpu.memory_space<vmem>>) attributes {dimension_semantics = [#tpu.dimension_semantics<parallel>], iteration_bounds = array<i64: 1>, scalar_prefetch = 0 : i64, scratch_operands = 0 : i64, tpu.core_type = #tpu.core_type<tc>, window_params = [{transform_indices = @transform_0, window_bounds = array<i64: 2, 32, 16>}, {pipeline_mode = #tpu.pipeline_mode<synchronous>, transform_indices = @transform_1, window_bounds = array<i64: 1, 32>}, {pipeline_mode = #tpu.pipeline_mode<synchronous>, transform_indices = @transform_2, window_bounds = array<i64: 32, 32>}, {pipeline_mode = #tpu.pipeline_mode<synchronous>, transform_indices = @transform_3, window_bounds = array<i64: 1, 32>}, {transform_indices = @transform_4, window_bounds = array<i64: 2, 32>}]} {
    %c0 = arith.constant 0 : index
    %c0_0 = arith.constant 0 : index
    %c0_1 = arith.constant 0 : index
    %0 = vector.load %arg1[%c0, %c0_0, %c0_1] : memref<2x32x16xf32, #tpu.memory_space<vmem>>, vector<2x32x16xf32>
    %1 = vector.shape_cast %0 : vector<2x32x16xf32> to vector<2x16x32xf32>
    %c0_2 = arith.constant 0 : index
    %c0_3 = arith.constant 0 : index
    %2 = vector.load %arg2[%c0_2, %c0_3] : memref<1x32xf32, #tpu.memory_space<vmem>>, vector<1x32xf32>
    %3 = vector.shape_cast %2 : vector<1x32xf32> to vector<1x1x32xf32>
    %4 = vector.shape_cast %3 : vector<1x1x32xf32> to vector<1x1x32xf32>
    %5 = vector.broadcast %4 : vector<1x1x32xf32> to vector<2x1x32xf32>
    "tpu.trace_start"() <{level = 10 : i32, message = "bkd,bnd->bkn"}> : () -> ()
    %cst = arith.constant dense<0.000000e+00> : vector<2x1x16xf32>
    %6 = tpu.matmul %5, %1, %cst {dimension_numbers = #tpu.dot_dimension_numbers<[2], [2], [1], [1], [0, 0, 0, 1, 1, 1], [0], [0]>} : vector<2x1x32xf32>, vector<2x16x32xf32>, vector<2x1x16xf32> -> vector<2x1x16xf32>
    "tpu.trace_stop"() : () -> ()
    %cst_4 = arith.constant dense<0xFF800000> : vector<2x1xf32>
    %7 = vector.multi_reduction <maximumf>, %6, %cst_4 [2] : vector<2x1x16xf32> to vector<2x1xf32>
    %8 = vector.shape_cast %7 : vector<2x1xf32> to vector<2x1x1xf32>
    %9 = vector.broadcast %8 : vector<2x1x1xf32> to vector<2x1x16xf32>
    %10 = arith.subf %6, %9 : vector<2x1x16xf32>
    %11 = math.exp %10 : vector<2x1x16xf32>
    %cst_5 = arith.constant dense<0.000000e+00> : vector<2x1xf32>
    %12 = vector.multi_reduction <add>, %11, %cst_5 [2] : vector<2x1x16xf32> to vector<2x1xf32>
    %13 = vector.shape_cast %12 : vector<2x1xf32> to vector<2x1x1xf32>
    "tpu.trace_start"() <{level = 10 : i32, message = "bkn,bdn->bkd"}> : () -> ()
    %cst_6 = arith.constant dense<0.000000e+00> : vector<2x1x32xf32>
    %14 = tpu.matmul %11, %0, %cst_6 {dimension_numbers = #tpu.dot_dimension_numbers<[2], [2], [1], [1], [0, 0, 0, 1, 1, 1], [0], [0]>} : vector<2x1x16xf32>, vector<2x32x16xf32>, vector<2x1x32xf32> -> vector<2x1x32xf32>
    "tpu.trace_stop"() : () -> ()
    %15 = tpu.reciprocal %13 : vector<2x1x1xf32> -> vector<2x1x1xf32>
    %16 = vector.broadcast %15 : vector<2x1x1xf32> to vector<2x1x32xf32>
    %17 = arith.mulf %14, %16 : vector<2x1x32xf32>
    %18 = vector.shape_cast %17 : vector<2x1x32xf32> to vector<2x32xf32>
    %19 = vector.broadcast %2 : vector<1x32xf32> to vector<2x32xf32>
    %20 = arith.addf %18, %19 : vector<2x32xf32>
    %c0_7 = arith.constant 0 : index
    %c0_8 = arith.constant 0 : index
    %21 = vector.load %arg3[%c0_7, %c0_8] : memref<32x32xf32, #tpu.memory_space<vmem>>, vector<32x32xf32>
    %cst_9 = arith.constant dense<0.000000e+00> : vector<2x32xf32>
    %22 = tpu.matmul %20, %21, %cst_9 {dimension_numbers = #tpu.dot_dimension_numbers<[1], [1], [0], [0], [0, 0, 1, 0], [], []>} : vector<2x32xf32>, vector<32x32xf32>, vector<2x32xf32> -> vector<2x32xf32>
    %c0_10 = arith.constant 0 : index
    %c0_11 = arith.constant 0 : index
    %23 = vector.load %arg4[%c0_10, %c0_11] : memref<1x32xf32, #tpu.memory_space<vmem>>, vector<1x32xf32>
    %24 = vector.broadcast %23 : vector<1x32xf32> to vector<2x32xf32>
    %25 = arith.addf %22, %24 : vector<2x32xf32>
    %26 = vector.broadcast %2 : vector<1x32xf32> to vector<2x32xf32>
    %27 = arith.addf %25, %26 : vector<2x32xf32>
    %c0_12 = arith.constant 0 : index
    %c0_13 = arith.constant 0 : index
    %28 = vector.load %arg5[%c0_12, %c0_13] : memref<2x32xf32, #tpu.memory_space<vmem>>, vector<2x32xf32>
    tpu.vector_store %arg5[%c0_12, %c0_13], %27 {strides = array<i32>} : memref<2x32xf32, #tpu.memory_space<vmem>>, vector<2x32xf32>,
    return
  }
  func.func @transform_0(%arg0: i32) -> (i32, i32, i32) {
    %c0_i32 = arith.constant 0 : i32
    %c0_i32_0 = arith.constant 0 : i32
    %c0_i32_1 = arith.constant 0 : i32
    return %arg0, %c0_i32, %c0_i32_0 : i32, i32, i32
  }
  func.func @transform_1(%arg0: i32) -> (i32, i32) {
    %c0_i32 = arith.constant 0 : i32
    %c0_i32_0 = arith.constant 0 : i32
    %c0_i32_1 = arith.constant 0 : i32
    return %c0_i32, %c0_i32_0 : i32, i32
  }
  func.func @transform_2(%arg0: i32) -> (i32, i32) {
    %c0_i32 = arith.constant 0 : i32
    %c0_i32_0 = arith.constant 0 : i32
    %c0_i32_1 = arith.constant 0 : i32
    return %c0_i32, %c0_i32_0 : i32, i32
  }
  func.func @transform_3(%arg0: i32) -> (i32, i32) {
    %c0_i32 = arith.constant 0 : i32
    %c0_i32_0 = arith.constant 0 : i32
    %c0_i32_1 = arith.constant 0 : i32
    return %c0_i32, %c0_i32_0 : i32, i32
  }
  func.func @transform_4(%arg0: i32) -> (i32, i32) {
    %c0_i32 = arith.constant 0 : i32
    %c0_i32_0 = arith.constant 0 : i32
    return %arg0, %c0_i32 : i32, i32
  }
}

module attributes {stable_mosaic.version = 11 : i64} {
  func.func @_attn_pool_kernel_dual(%arg0: i32, %arg1: memref<2x16x32xf32, #tpu.memory_space<vmem>>, %arg2: memref<2x32x16xf32, #tpu.memory_space<vmem>>, %arg3: memref<1x32xf32, #tpu.memory_space<vmem>>, %arg4: memref<32x32xf32, #tpu.memory_space<vmem>>, %arg5: memref<1x32xf32, #tpu.memory_space<vmem>>, %arg6: memref<2x32xf32, #tpu.memory_space<vmem>>) attributes {dimension_semantics = [#tpu.dimension_semantics<parallel>], iteration_bounds = array<i64: 1>, scalar_prefetch = 0 : i64, scratch_operands = 0 : i64, tpu.core_type = #tpu.core_type<tc>, window_params = [{transform_indices = @transform_0, window_bounds = array<i64: 2, 16, 32>}, {transform_indices = @transform_1, window_bounds = array<i64: 2, 32, 16>}, {pipeline_mode = #tpu.pipeline_mode<synchronous>, transform_indices = @transform_2, window_bounds = array<i64: 1, 32>}, {pipeline_mode = #tpu.pipeline_mode<synchronous>, transform_indices = @transform_3, window_bounds = array<i64: 32, 32>}, {pipeline_mode = #tpu.pipeline_mode<synchronous>, transform_indices = @transform_4, window_bounds = array<i64: 1, 32>}, {transform_indices = @transform_5, window_bounds = array<i64: 2, 32>}]} {
    %c0 = arith.constant 0 : index
    %c0_0 = arith.constant 0 : index
    %c0_1 = arith.constant 0 : index
    %0 = vector.load %arg2[%c0, %c0_0, %c0_1] : memref<2x32x16xf32, #tpu.memory_space<vmem>>, vector<2x32x16xf32>
    %c0_2 = arith.constant 0 : index
    %c0_3 = arith.constant 0 : index
    %c0_4 = arith.constant 0 : index
    %1 = vector.load %arg1[%c0_2, %c0_3, %c0_4] : memref<2x16x32xf32, #tpu.memory_space<vmem>>, vector<2x16x32xf32>
    %c0_5 = arith.constant 0 : index
    %c0_6 = arith.constant 0 : index
    %2 = vector.load %arg3[%c0_5, %c0_6] : memref<1x32xf32, #tpu.memory_space<vmem>>, vector<1x32xf32>
    %3 = vector.shape_cast %2 : vector<1x32xf32> to vector<1x1x32xf32>
    %4 = vector.shape_cast %3 : vector<1x1x32xf32> to vector<1x1x32xf32>
    %5 = vector.broadcast %4 : vector<1x1x32xf32> to vector<2x1x32xf32>
    "tpu.trace_start"() <{level = 10 : i32, message = "bkd,bnd->bkn"}> : () -> ()
    %cst = arith.constant dense<0.000000e+00> : vector<2x1x16xf32>
    %6 = tpu.matmul %5, %1, %cst {dimension_numbers = #tpu.dot_dimension_numbers<[2], [2], [1], [1], [0, 0, 0, 1, 1, 1], [0], [0]>} : vector<2x1x32xf32>, vector<2x16x32xf32>, vector<2x1x16xf32> -> vector<2x1x16xf32>
    "tpu.trace_stop"() : () -> ()
    %cst_7 = arith.constant dense<0xFF800000> : vector<2x1xf32>
    %7 = vector.multi_reduction <maximumf>, %6, %cst_7 [2] : vector<2x1x16xf32> to vector<2x1xf32>
    %8 = vector.shape_cast %7 : vector<2x1xf32> to vector<2x1x1xf32>
    %9 = vector.broadcast %8 : vector<2x1x1xf32> to vector<2x1x16xf32>
    %10 = arith.subf %6, %9 : vector<2x1x16xf32>
    %11 = math.exp %10 : vector<2x1x16xf32>
    %cst_8 = arith.constant dense<0.000000e+00> : vector<2x1xf32>
    %12 = vector.multi_reduction <add>, %11, %cst_8 [2] : vector<2x1x16xf32> to vector<2x1xf32>
    %13 = vector.shape_cast %12 : vector<2x1xf32> to vector<2x1x1xf32>
    "tpu.trace_start"() <{level = 10 : i32, message = "bkn,bdn->bkd"}> : () -> ()
    %cst_9 = arith.constant dense<0.000000e+00> : vector<2x1x32xf32>
    %14 = tpu.matmul %11, %0, %cst_9 {dimension_numbers = #tpu.dot_dimension_numbers<[2], [2], [1], [1], [0, 0, 0, 1, 1, 1], [0], [0]>} : vector<2x1x16xf32>, vector<2x32x16xf32>, vector<2x1x32xf32> -> vector<2x1x32xf32>
    "tpu.trace_stop"() : () -> ()
    %15 = tpu.reciprocal %13 : vector<2x1x1xf32> -> vector<2x1x1xf32>
    %16 = vector.broadcast %15 : vector<2x1x1xf32> to vector<2x1x32xf32>
    %17 = arith.mulf %14, %16 : vector<2x1x32xf32>
    %18 = vector.shape_cast %17 : vector<2x1x32xf32> to vector<2x32xf32>
    %19 = vector.broadcast %2 : vector<1x32xf32> to vector<2x32xf32>
    %20 = arith.addf %18, %19 : vector<2x32xf32>
    %c0_10 = arith.constant 0 : index
    %c0_11 = arith.constant 0 : index
    %21 = vector.load %arg4[%c0_10, %c0_11] : memref<32x32xf32, #tpu.memory_space<vmem>>, vector<32x32xf32>
    %cst_12 = arith.constant dense<0.000000e+00> : vector<2x32xf32>
    %22 = tpu.matmul %20, %21, %cst_12 {dimension_numbers = #tpu.dot_dimension_numbers<[1], [1], [0], [0], [0, 0, 1, 0], [], []>} : vector<2x32xf32>, vector<32x32xf32>, vector<2x32xf32> -> vector<2x32xf32>
    %c0_13 = arith.constant 0 : index
    %c0_14 = arith.constant 0 : index
    %23 = vector.load %arg5[%c0_13, %c0_14] : memref<1x32xf32, #tpu.memory_space<vmem>>, vector<1x32xf32>
    %24 = vector.broadcast %23 : vector<1x32xf32> to vector<2x32xf32>
    %25 = arith.addf %22, %24 : vector<2x32xf32>
    %26 = vector.broadcast %2 : vector<1x32xf32> to vector<2x32xf32>
    %27 = arith.addf %25, %26 : vector<2x32xf32>
    %c0_15 = arith.constant 0 : index
    %c0_16 = arith.constant 0 : index
    %28 = vector.load %arg6[%c0_15, %c0_16] : memref<2x32xf32, #tpu.memory_space<vmem>>, vector<2x32xf32>
    tpu.vector_store %arg6[%c0_15, %c0_16], %27 {strides = array<i32>} : memref<2x32xf32, #tpu.memory_space<vmem>>, vector<2x32xf32>,
    return
  }
  func.func @transform_0(%arg0: i32) -> (i32, i32, i32) {
    %c0_i32 = arith.constant 0 : i32
    %c0_i32_0 = arith.constant 0 : i32
    %c0_i32_1 = arith.constant 0 : i32
    return %arg0, %c0_i32, %c0_i32_0 : i32, i32, i32
  }
  func.func @transform_1(%arg0: i32) -> (i32, i32, i32) {
    %c0_i32 = arith.constant 0 : i32
    %c0_i32_0 = arith.constant 0 : i32
    %c0_i32_1 = arith.constant 0 : i32
    return %arg0, %c0_i32, %c0_i32_0 : i32, i32, i32
  }
  func.func @transform_2(%arg0: i32) -> (i32, i32) {
    %c0_i32 = arith.constant 0 : i32
    %c0_i32_0 = arith.constant 0 : i32
    %c0_i32_1 = arith.constant 0 : i32
    return %c0_i32, %c0_i32_0 : i32, i32
  }
  func.func @transform_3(%arg0: i32) -> (i32, i32) {
    %c0_i32 = arith.constant 0 : i32
    %c0_i32_0 = arith.constant 0 : i32
    %c0_i32_1 = arith.constant 0 : i32
    return %c0_i32, %c0_i32_0 : i32, i32
  }
  func.func @transform_4(%arg0: i32) -> (i32, i32) {
    %c0_i32 = arith.constant 0 : i32
    %c0_i32_0 = arith.constant 0 : i32
    %c0_i32_1 = arith.constant 0 : i32
    return %c0_i32, %c0_i32_0 : i32, i32
  }
  func.func @transform_5(%arg0: i32) -> (i32, i32) {
    %c0_i32 = arith.constant 0 : i32
    %c0_i32_0 = arith.constant 0 : i32
    return %arg0, %c0_i32 : i32, i32
  }
}

</mosaic_0001>

<bundles_post_ra>
// kernel: tpu_custom_call.1
= control target key start
LH: loop header
LB: loop body
LE: loop exit
PB: predicated region body
PF: predicated region fallthrough
CT: control target
= control target key end

     0   :  { %vm34_vm0 = vcmask 261120   ;;  %v666_v2 = vmov 0.0|0.0   ;;  %vm667_vm2 = vmmov 0   ;;  %v668_v5 = vmov 0.0   ;;  %s814_s0 = inlined_call_operand.vmem [shape: f32[2,16,32], index: 0, kind: input, shape index: {}]   ;;  %s815_s1 = inlined_call_operand.vmem [shape: f32[2,32,16], index: 1, kind: input, shape index: {}]   ;;  %s816_s2 = inlined_call_operand.vmem [shape: f32[1,32], index: 2, kind: input, shape index: {}]   ;;  %s817_s3 = inlined_call_operand.vmem [shape: f32[32,32], index: 3, kind: input, shape index: {}]   ;;  %s818_s4 = inlined_call_operand.vmem [shape: f32[1,32], index: 4, kind: input, shape index: {}]   ;;  %s819_s5 = inlined_call_operand.hbm [shape: f32[2,32], index: 5, kind: output, shape index: {}]  }
   0x1   :  { %v29_v0 = vld [vmem:[%s814_s0] sm:$0xff]  ;;  %v30_v1 = vld [vmem:[%s814_s0 + $0x8] sm:$0xff]  ;;  %598 = vmatprep.subr.bf16.mxu1 %v666_v2  ;;  %vm709_vm1 = vmpackc.low %vm34_vm0, %vm34_vm0  ;;  %555 = vmatprep.mubr.msk.f32.mxu1 %vm667_vm2, %v668_v5 }
   0x2   :  { %v599_v3 = vpack.c.bf16 %v30_v1, %v29_v0  ;;  %606 = vmatprep.subr.bf16.mxu0 %v666_v2  ;;  %573 = vmatprep.mubr.msk.f32.mxu0 %vm667_vm2, %v668_v5 }
   0x3   :  { %10 = vsyncpa [#allocation3], 0  ;;  %v31_v6 = vld [vmem:[%s814_s0 + $0x10] sm:$0xff]  ;;  %v32_v7 = vld [vmem:[%s814_s0 + $0x18] sm:$0xff]  ;;  %vm190_vm3 = vcmask 122880   ;;  %vm209_vm4 = vcmask 130048   ;;  %v384_v45 = vlaneseq }
   0x4   :  { %601 = vmatpush3.bf16.xpose.msk.msra.mxu1 %vm709_vm1, %v599_v3  ;;  %v730_v8 = vld [vmem:[%s816_s2] sm:$0x1]  ;;  %v603_v9 = vpack.c.bf16 %v32_v7, %v31_v6  ;;  %v26_v17 = vld [vmem:[%s815_s1 + $0x28] sm:$0xff]  ;;  %vm608_vm5 = vmpackc.low %vm209_vm4, %vm209_vm4  ;;  %vm405_vm6 = vcmask 1041409   ;;  %s669_s25 = smov [#allocation2]   ;;  %vm492_vm7 = vcmask 254976  }
   0x5   :  { %602 = vmatprep.subr.bf16.mxu1 %v666_v2  ;;  %v25_v16 = vld [vmem:[%s815_s1 + $0x20] sm:$0xff]  ;;  %v22_v20 = vld [vmem:[%s815_s1 + $0x8] sm:$0xff]  ;;  %v27_v22 = vld [vmem:[%s815_s1 + $0x30] sm:$0xff]  ;;  %v385_v46 = vshrl.u32 %v384_v45, 7  ;;  %s500_s26 = sshll.u32 %s669_s25, 4  ;;  %s501_s26 = int_to_ptr.vmem [resolvable:$true] %s500_s26 }
   0x6   :  { %v615_v18 = vpack.c.bf16 %v26_v17, %v25_v16  ;;  %v21_v19 = vld [vmem:[%s815_s1] sm:$0xff]  ;;  %v28_v23 = vld [vmem:[%s815_s1 + $0x38] sm:$0xff]  ;;  %v23_v25 = vld [vmem:[%s815_s1 + $0x10] sm:$0xff]  ;;  %s642_s27 = scalar_lea.vmem %s501_s26, 32  ;;  %p647_p1 = scmp.lt.s32.totalorder %s501_s26, %s501_s26 }
   0x7   :  { %v607_v21 = vpack.c.bf16 %v22_v20, %v21_v19  ;;  %v619_v24 = vpack.c.bf16 %v28_v23, %v27_v22  ;;  %v24_v26 = vld [vmem:[%s815_s1 + $0x18] sm:$0xff]  ;;  %v391_v38 = vld [vmem:[%s817_s3] sm:$0xff]  ;;  %v392_v39 = vld [vmem:[%s817_s3 + $0x8] sm:$0xff]  ;;  %v386_v48 = vsub.s32 0, %v385_v46  ;;  %p643_p0 = scmp.ne.s32.totalorder %s501_s26, %s642_s27  ;;  %p648_p2 = scmp.lt.s32.totalorder %s642_s27, %s642_s27 }
   0x8   :  { %v611_v27 = vpack.c.bf16 %v24_v26, %v23_v25  ;;  %v623_v40 = vpack.c.bf16 %v392_v39, %v391_v38  ;;  %v393_v41 = vld [vmem:[%s817_s3 + $0x10] sm:$0xff]  ;;  %v394_v42 = vld [vmem:[%s817_s3 + $0x18] sm:$0xff]  ;;  %v524_v62 = vld [vmem:[%s818_s4] ss:$0 sm:$0xff] }
   0x9   :  { %609 = vmatpush3.bf16.xpose.msk.msra.mxu0 %vm608_vm5, %v607_v21  ;;  %v627_v43 = vpack.c.bf16 %v394_v42, %v393_v41  ;;  %v387_v49 = vrot.slane %v730_v8, %v386_v48  ;;  %p649_p3 = por %p648_p2, %p647_p1 }
   0xa   :  { %610 = vmatprep.subr.bf16.mxu0 %v666_v2 }
   0xb   :  { %556 = vmatmul.mubr.msk.f32.vlgmr.msra.gmra.mrb[0].mxu1 %vm34_vm0, %v730_v8  ;;  %p650_p4 = pnand %p649_p3, %p643_p0 }
   0xc   :  { %605 = vmatpush3.bf16.xpose.msk.msra.mxu1 %vm709_vm1, %v603_v9  ;;  %562 = vmatprep.mubr.msk.f32.mxu1 %vm667_vm2, %v668_v5 }
   0xd   :  { %614 = vmatprep.subr.bf16.mxu1 %v666_v2 }
  0x11   :  { %613 = vmatpush3.bf16.xpose.msk.msra.mxu0 %vm608_vm5, %v611_v27 }
  0x12   :  { %622 = vmatprep.subr.bf16.mxu0 %v666_v2 }
  0x13   :  { %563 = vmatmul.mubr.msk.f32.vlgmr.msra.gmra.mrb[2].mxu1 %vm34_vm0, %v730_v8 }
  0x14   :  { %584 = vmatprep.mubr.msk.f32.mxu1 %vm667_vm2, %v668_v5  ;;  %617 = vmatpush3.bf16.xpose.msk.msra.mxu1 %vm608_vm5, %v615_v18 }
  0x15   :  { %618 = vmatprep.subr.bf16.mxu1 %v666_v2 }
  0x1c   :  { %621 = vmatpush3.bf16.xpose.msk.msra.mxu1 %vm608_vm5, %v619_v24 }
  0xde   :  { %v110_v10 = vpop.f32.mrb[0].mxu1 }
  0xdf   :  { %v557_v11 = vpop.f32.mrb[1].mxu1  ;;  %v191_v15 = vsel %vm190_vm3, %v110_v10, -inf }
  0xe6   :  { %v186_v12 = vpop.f32.mrb[2].mxu1 }
  0xe7   :  { %v564_v13 = vpop.f32.mrb[3].mxu1  ;;  %v194_v14 = vsel %vm190_vm3, %v186_v12, -inf }
  0xe8   :  { %195 = vmax.xlane.f32.xlu0 %v194_v14 }
  0xec   :  { %192 = vmax.xlane.f32.xlu0 %v191_v15 }
 0x175   :  { %v196_v28 = vpop.xlane.xlu0 %195 }
 0x176   :  { %v198_v29 = vsub.f32 %v186_v12, %v196_v28 }
 0x178   :  { %v201_v30 = vmul.f32 1.442695, %v198_v29 }
 0x179   :  { %v193_v31 = vpop.xlane.xlu0 %192 }
 0x17a   :  { %634 = vpow2.f32 %v201_v30  ;;  %v197_v32 = vsub.f32 %v110_v10, %v193_v31 }
 0x17c   :  { %v199_v33 = vmul.f32 1.442695, %v197_v32 }
 0x17e   :  { %636 = vpow2.f32 %v199_v33 }
 0x184   :  { %v635_v34 = vpop.eup %634 }
 0x185   :  { %585 = vmatmul.mubr.msk.f32.vlgmr.msra.gmra.mrb[4].mxu1 %vm209_vm4, %v635_v34  ;;  %v206_v35 = vsel %vm190_vm3, %v635_v34, 0.0 }
 0x186   :  { %207 = vadd.xlane.f32.xlu1 %v206_v35 }
 0x188   :  { %v637_v36 = vpop.eup %636 }
 0x189   :  { %574 = vmatmul.mubr.msk.f32.vlgmr.msra.gmra.mrb[0].mxu0 %vm209_vm4, %v637_v36  ;;  %v203_v37 = vsel %vm190_vm3, %v637_v36, 0.0 }
 0x18a   :  { %204 = vadd.xlane.f32.xlu1 %v203_v37  ;;  %595 = vmatprep.mubr.msk.f32.mxu0 %vm667_vm2, %v668_v5 }
 0x18b   :  { %625 = vmatpush3.bf16.xpose.msk.msra.mxu0 %vm709_vm1, %v623_v40 }
 0x18c   :  { %626 = vmatprep.subr.bf16.mxu0 %v666_v2 }
 0x193   :  { %629 = vmatpush3.bf16.xpose.msk.msra.mxu0 %vm709_vm1, %v627_v43 }
 0x213   :  { %v208_v44 = vpop.xlane.xlu1 %207 }
 0x214   :  { %638 = vrcp.f32 %v208_v44 }
 0x217   :  { %v205_v47 = vpop.xlane.xlu1 %204 }
 0x218   :  { %640 = vrcp.f32 %v205_v47 }
 0x21e   :  { %v639_v50 = vpop.eup %638 }
 0x222   :  { %v641_v55 = vpop.eup %640 }
 0x258   :  { %v376_v51 = vpop.f32.mrb[4].mxu1 }
 0x259   :  { %v383_v52 = vmul.f32 %v639_v50, %v376_v51  ;;  %v586_v53 = vpop.f32.mrb[5].mxu1 }
 0x25b   :  { %v390_v54 = vadd.f32 %v387_v49, %v383_v52 }
 0x25c   :  { %v291_v56 = vpop.f32.mrb[0].mxu0 }
 0x25d   :  { %v382_v57 = vmul.f32 %v641_v55, %v291_v56  ;;  %v575_v58 = vpop.f32.mrb[1].mxu0  ;;  %v404_v59 = vrot.slane %v390_v54, 7 }
 0x25f   :  { %v389_v60 = vadd.f32 %v387_v49, %v382_v57 }
 0x261   :  { %v406_v61 = vsel %vm405_vm6, %v404_v59, %v389_v60 }
 0x262   :  { %596 = vmatmul.mubr.msk.f32.vlgmr.msra.gmra.mrb[2].mxu0 %vm34_vm0, %v406_v61 }
 0x335   :  { %v487_v63 = vpop.f32.mrb[2].mxu0 }
 0x336   :  { %v488_v0 = vadd.f32 %v524_v62, %v487_v63  ;;  %v597_v1 = vpop.f32.mrb[3].mxu0 }
 0x338   :  { %v491_v2 = vadd.f32 %v488_v0, %v387_v49 }
 0x33a   :  { %493 = vst.msk [vmem:[#allocation2] sm:$0x3] %vm492_vm7, %v491_v2 }
 0x33b   :  { %653 = shalt.err (!%p650_p4)
}
 0x33c   :  { %s654_s4 = scalar_lea.hbm %s819_s5, 32 }
 0x33d   :  { %p655_p5 = scmp.ne.s32.totalorder %s819_s5, %s654_s4  ;;  %p658_p6 = scmp.lt.u32.totalorder %s654_s4, %s819_s5 }
 0x33f   :  { %p660_p7 = pnand %p658_p6, %p655_p5 }
 0x341   :  { %663 = shalt.err (!%p660_p7)
}
 0x342   :  { %503 = dma.vmem_to_hbm [thread:$0]  %s501_s26, 32, %s819_s5, [#allocation3]  }
 0x343   :  { %664 = dma.done.wait [#allocation3], 32  }
 0x344   :  { %665 = vsyncadd [#allocation3], 4294967264 }
 0x345   :  { %507 = vsyncpa [#allocation3], 1 }

</bundles_post_ra>
